<compile_context>
chip_gen: v7x
topology: tpu7x:2x2x1
jax: 0.10.0
libtpu: 0.0.40
codegen_flags: <defaults>
</compile_context>

<pallas_src>
import jax
import jax.numpy as jnp
import numpy as np
from jax.experimental import pallas as pl
from jax.experimental.pallas import tpu as pltpu

F32_EPS = float(np.finfo(np.float32).eps)    # == torch.finfo(torch.float32).eps
F32_TINY = float(np.finfo(np.float32).tiny)


def _make_gta_kernel(has_mask):
    def kernel(*refs):
        if has_mask:
            (x_ref, mask_ref, w1_ref, b1_ref, w2_ref, b2_ref,
             o_ref, m_ref, l_ref, acc_ref) = refs
        else:
            (x_ref, w1_ref, b1_ref, w2_ref, b2_ref,
             o_ref, m_ref, l_ref, acc_ref) = refs
            mask_ref = None

        t = pl.program_id(1)

        @pl.when(t == 0)
        def _init():
            m_ref[...] = jnp.full_like(m_ref, -jnp.inf)
            l_ref[...] = jnp.zeros_like(l_ref)
            acc_ref[...] = jnp.zeros_like(acc_ref)

        Bb, Tc, D = x_ref.shape
        x3 = x_ref[...]                                   # (Bb, Tc, D)

        # linear_tanh: one MXU matmul with batch+time folded into M, f32 acc.
        pre = (jnp.dot(x3.reshape(Bb * Tc, D), w1_ref[...],
                       preferred_element_type=jnp.float32)
               + b1_ref[...])                             # (Bb*Tc, D) f32
        u3 = jnp.tanh(pre).reshape(Bb, Tc, D)             # f32, EUP

        # g_net score: VPU multiply + lane reduction over D (no q==1 MXU
        # einsum).  Scores land lane-dense (Bb, Tc) so exp() is ~1/D of the
        # tanh EUP cost.
        s = (jnp.sum(u3 * w2_ref[...].reshape(1, 1, D), axis=-1)
             + b2_ref[0])                                 # (Bb, Tc) f32

        # Online (flash-style) exp-normalization state update over T chunks.
        m_prev = m_ref[...]                               # (Bb, 1)
        m_new = jnp.maximum(m_prev, jnp.max(s, axis=-1, keepdims=True))
        alpha = jnp.exp(m_prev - m_new)                   # (Bb, 1)
        p = jnp.exp(s - m_new)                            # (Bb, Tc) f32
        if has_mask:
            p = p * mask_ref[...].reshape(Bb, Tc)
        l_ref[...] = alpha * l_ref[...] + jnp.sum(p, axis=-1, keepdims=True)

        # Weighted T-reduction on the VPU in f32 (attention weights stay f32;
        # a q==1 batched MXU matmul here would be weight-push bound).
        xw = x3.astype(jnp.float32) * p[:, :, None]       # (Bb, Tc, D) f32
        acc_ref[...] = alpha * acc_ref[...] + jnp.sum(xw, axis=1)
        m_ref[...] = m_new

        @pl.when(t == pl.num_programs(1) - 1)
        def _finalize():
            # Undo the max shift inside the epsilon so a / (sum(a) + eps)
            # matches the PyTorch reference exactly; clamp away from zero so
            # fully-masked rows return 0 instead of NaN.
            denom = l_ref[...] + F32_EPS * jnp.exp(-m_ref[...])
            denom = jnp.maximum(denom, F32_TINY)
            inv = pl.reciprocal(denom, approx=False)      # (Bb, 1)
            o_ref[...] = (acc_ref[...] * inv).astype(o_ref.dtype)

    return kernel


def _vmem_policy():
    """Generation-aware scoped-VMEM limit: ~3/4 of physical VMEM.
    v5e/v6e: 128 MiB -> ~96 MiB; v7x: 64 MiB -> ~48 MiB."""
    try:
        cap = int(pltpu.get_tpu_info().vmem_capacity_bytes)
    except Exception:
        cap = 64 * 1024 * 1024          # conservative fallback (v7x per-core)
    limit = min((cap * 3) // 4, 100 * 1024 * 1024)
    return limit, cap


def _choose_blocks(B, T, D, x_bytes, has_mask, block_budget):
    """Pick (Bb, Tc): fit the per-step working set in block_budget and fold
    >= ~1024 rows into the MXU M dimension where possible."""
    # Generous per-element model for one (Bb, Tc, D) block: x double-buffered
    # + f32 pre-tanh/u + f32 score product + f32 x cast + f32 x*p product.
    per_elem = 2 * x_bytes + 16

    def fits(bb, tc):
        return bb * tc * D * per_elem <= block_budget

    # Bb candidates keep the (Bb, D) output block sublane-aligned.
    bb_cands = sorted(d for d in range(1, B + 1)
                      if B % d == 0 and (d % 8 == 0 or d == B))
    fitting = [bb for bb in bb_cands if fits(bb, T)]
    if fitting:
        # >= 1024 folded rows reaches ~85% of the HBM roofline (vs ~63% at
        # 256); among those take the smallest so the batch grid keeps several
        # steps for pipelining / megacore, else the largest that fits.
        big = [bb for bb in fitting if bb * T >= 1024]
        return (big[0] if big else fitting[-1]), T

    # A whole sequence does not fit: flash-style T tiling.  The (Bb, 1, Tc)
    # mask block needs a lane-aligned Tc; x only needs sublane alignment.
    bb = bb_cands[0]
    t_align = 128 if has_mask else 8
    tc_fit = [tc for tc in range(t_align, T, t_align)
              if T % tc == 0 and fits(bb, tc)]
    if tc_fit:
        return bb, tc_fit[-1]
    # TODO(synk): ragged T (no aligned divisor chunk fits) falls back to the
    # whole sequence per step and relies on the raised VMEM limit.
    return bb, T


def global_temporal_attention(x, w1, b1, w2, b2, mask=None, *,
                              matmul_dtype=jnp.bfloat16,
                              block_b=None, block_t=None):
    """x: (B, T, D); mask: (B, T) (or broadcastable) or None.  Returns (B, D) f32.

    bf16 MXU operands are the default; accumulation, tanh/exp, the attention
    weights and the weighted sum stay float32.  Pass matmul_dtype=jnp.float32
    for a reference-accurate f32 path."""
    B, T, D = x.shape
    has_mask = mask is not None
    mm_dt = np.dtype(matmul_dtype)

    x_in = x.astype(mm_dt)                  # bf16 path halves HBM/VMEM for x
    w1_in = w1.astype(mm_dt)                # ... and for W1
    b1_2d = b1.reshape(1, D).astype(jnp.float32)
    w2_2d = w2.reshape(1, D).astype(jnp.float32)
    b2_1d = b2.reshape(1).astype(jnp.float32)

    vmem_limit, vmem_cap = _vmem_policy()
    # Grid-invariant operands (double-buffered by the pipeliner) + headroom.
    # NOTE: pl.Buffered(1) single-buffering of W1/b1/w2 would reclaim another
    # D*D*itemsize of VMEM for larger Bb (review item); left at the default.
    fixed = 2 * D * D * w1_in.dtype.itemsize + 8 * D * 4 + (4 << 20)
    block_budget = max(vmem_limit - fixed, 4 << 20)

    Bb, Tc = _choose_blocks(B, T, D, x_in.dtype.itemsize, has_mask, block_budget)
    if block_b is not None:
        Bb = block_b
    if block_t is not None:
        Tc = block_t
    assert B % Bb == 0 and T % Tc == 0, (B, Bb, T, Tc)

    in_specs = [pl.BlockSpec((Bb, Tc, D), lambda b, t: (b, t, 0))]       # x
    inputs = [x_in]
    if has_mask:
        in_specs.append(pl.BlockSpec((Bb, 1, Tc), lambda b, t: (b, 0, t)))
        inputs.append(jnp.asarray(mask).reshape(B, 1, T).astype(jnp.float32))
    in_specs += [
        pl.BlockSpec((D, D), lambda b, t: (0, 0)),                       # W1
        pl.BlockSpec((1, D), lambda b, t: (0, 0)),                       # b1
        pl.BlockSpec((1, D), lambda b, t: (0, 0)),                       # w2
        pl.BlockSpec((1,), lambda b, t: (0,),
                     memory_space=pltpu.MemorySpace.SMEM),               # b2
    ]
    inputs += [w1_in, b1_2d, w2_2d, b2_1d]

    # VMEM estimate including the f32 kernel intermediates; keep headroom
    # below physical VMEM on every generation.
    xb = x_in.dtype.itemsize
    est = (2 * Bb * Tc * D * xb              # x block, double-buffered
           + 4 * Bb * Tc * D * 4             # pre/u, score product, x cast, x*p
           + (2 * Bb * Tc * 4 if has_mask else 0)
           + fixed
           + 3 * Bb * D * 4 + Bb * 16)       # out (x2) + acc scratch + m/l
    upper = max(vmem_cap - (8 << 20), (3 * vmem_cap) // 4)
    vmem_limit = int(min(max(vmem_limit, est + (4 << 20)), upper))

    out = pl.pallas_call(
        _make_gta_kernel(has_mask),
        out_shape=jax.ShapeDtypeStruct((B, D), jnp.float32),
        grid_spec=pltpu.PrefetchScalarGridSpec(
            num_scalar_prefetch=0,
            grid=(B // Bb, T // Tc),
            in_specs=in_specs,
            out_specs=pl.BlockSpec((Bb, D), lambda b, t: (b, 0)),
            scratch_shapes=[pltpu.VMEM((Bb, 1), jnp.float32),    # running max
                            pltpu.VMEM((Bb, 1), jnp.float32),    # running sum
                            pltpu.VMEM((Bb, D), jnp.float32)],   # f32 accumulator
        ),
        compiler_params=pltpu.CompilerParams(
            # Batch axis parallel (v7x megacore); T axis is the reduction.
            dimension_semantics=("parallel", "arbitrary"),
            vmem_limit_bytes=vmem_limit,
        ),
    )(*inputs)
    return out


def _reference(x, w1, b1, w2, b2, mask=None):
    u = jnp.tanh(x @ w1 + b1)
    ait = u @ w2.reshape(-1, 1) + b2
    a = jnp.exp(ait)
    if mask is not None:
        a = a * mask[..., None]
    a = a / (jnp.sum(a, axis=1, keepdims=True) + F32_EPS)
    return jnp.sum(x * a, axis=1)


if __name__ == "__main__":
    B, T, D = 2, 8, 32   # batch, seq, model_dim

    key = jax.random.PRNGKey(0)
    kx, kw1, kb1, kw2, kb2 = jax.random.split(key, 5)

    x = jax.random.normal(kx, (B, T, D), dtype=jnp.float32)

    # PyTorch-style uniform(-1/sqrt(D), 1/sqrt(D)) init.
    bound = 1.0 / np.sqrt(D)
    w1 = jax.random.uniform(kw1, (D, D), jnp.float32, -bound, bound)
    b1 = jax.random.uniform(kb1, (D,), jnp.float32, -bound, bound)
    w2 = jax.random.uniform(kw2, (D,), jnp.float32, -bound, bound)
    b2 = jax.random.uniform(kb2, (1,), jnp.float32, -bound, bound)

    # Deterministic non-degenerate mask (valid lengths per sequence).
    lengths = jnp.array([T, 5], dtype=jnp.int32)
    mask = (jnp.arange(T)[None, :] < lengths[:, None]).astype(jnp.float32)

    # TODO(synk): Dropout(p>0) training-mode RNG not implemented; p=0.0 (identity).

    ref = _reference(x, w1, b1, w2, b2)
    ref_m = _reference(x, w1, b1, w2, b2, mask=mask)

    # Reference-accurate f32 path, no mask.
    out = jax.block_until_ready(
        global_temporal_attention(x, w1, b1, w2, b2, matmul_dtype=jnp.float32))
    assert out.shape == (B, D)
    assert np.allclose(np.asarray(out), np.asarray(ref), rtol=1e-5, atol=1e-5)

    # Reference-accurate f32 path, with mask.
    out_m = jax.block_until_ready(
        global_temporal_attention(x, w1, b1, w2, b2, mask=mask,
                                  matmul_dtype=jnp.float32))
    assert np.allclose(np.asarray(out_m), np.asarray(ref_m), rtol=1e-5, atol=1e-5)

    # Default bf16-MXU fast path (f32 accumulation / weights); looser tolerance.
    out_bf = jax.block_until_ready(
        global_temporal_attention(x, w1, b1, w2, b2, mask=mask))
    assert np.all(np.isfinite(np.asarray(out_bf)))
    assert np.max(np.abs(np.asarray(out_bf) - np.asarray(ref_m))) < 0.2

    print("KERNEL_OK")
</pallas_src>

<mosaic_0001>
module attributes {stable_mosaic.version = 11 : i64} {
  func.func @kernel(%arg0: i32, %arg1: i32, %arg2: memref<2x8x32xf32, #tpu.memory_space<vmem>>, %arg3: memref<32x32xf32, #tpu.memory_space<vmem>>, %arg4: memref<1x32xf32, #tpu.memory_space<vmem>>, %arg5: memref<1x32xf32, #tpu.memory_space<vmem>>, %arg6: memref<1xf32, #tpu.memory_space<smem>>, %arg7: memref<2x32xf32, #tpu.memory_space<vmem>>, %arg8: memref<2x1xf32, #tpu.memory_space<vmem>>, %arg9: memref<2x1xf32, #tpu.memory_space<vmem>>, %arg10: memref<2x32xf32, #tpu.memory_space<vmem>>) attributes {dimension_semantics = [#tpu.dimension_semantics<parallel>, #tpu.dimension_semantics<arbitrary>], iteration_bounds = array<i64: 1, 1>, scalar_prefetch = 0 : i64, scratch_operands = 3 : i64, tpu.core_type = #tpu.core_type<tc>, window_params = [{transform_indices = @transform_0, window_bounds = array<i64: 2, 8, 32>}, {pipeline_mode = #tpu.pipeline_mode<synchronous>, transform_indices = @transform_1, window_bounds = array<i64: 32, 32>}, {pipeline_mode = #tpu.pipeline_mode<synchronous>, transform_indices = @transform_2, window_bounds = array<i64: 1, 32>}, {pipeline_mode = #tpu.pipeline_mode<synchronous>, transform_indices = @transform_3, window_bounds = array<i64: 1, 32>}, {transform_indices = @transform_4, window_bounds = array<i64: 1>}, {transform_indices = @transform_5, window_bounds = array<i64: 2, 32>}]} {
    %c0_i32 = arith.constant 0 : i32
    %0 = arith.cmpi eq, %arg1, %c0_i32 : i32
    %1 = arith.extui %0 : i1 to i32
    %c0_i32_0 = arith.constant 0 : i32
    %2 = arith.cmpi ne, %1, %c0_i32_0 : i32
    scf.if %2 {
      %cst_28 = arith.constant 0xFF800000 : f32
      %48 = vector.broadcast %cst_28 : f32 to vector<2x1xf32>
      %c0_29 = arith.constant 0 : index
      %c0_30 = arith.constant 0 : index
      %49 = vector.load %arg8[%c0_29, %c0_30] : memref<2x1xf32, #tpu.memory_space<vmem>>, vector<2x1xf32>
      tpu.vector_store %arg8[%c0_29, %c0_30], %48 {strides = array<i32>} : memref<2x1xf32, #tpu.memory_space<vmem>>, vector<2x1xf32>,
      %cst_31 = arith.constant 0.000000e+00 : f32
      %50 = vector.broadcast %cst_31 : f32 to vector<2x1xf32>
      %c0_32 = arith.constant 0 : index
      %c0_33 = arith.constant 0 : index
      %51 = vector.load %arg9[%c0_32, %c0_33] : memref<2x1xf32, #tpu.memory_space<vmem>>, vector<2x1xf32>
      tpu.vector_store %arg9[%c0_32, %c0_33], %50 {strides = array<i32>} : memref<2x1xf32, #tpu.memory_space<vmem>>, vector<2x1xf32>,
      %cst_34 = arith.constant 0.000000e+00 : f32
      %52 = vector.broadcast %cst_34 : f32 to vector<2x32xf32>
      %c0_35 = arith.constant 0 : index
      %c0_36 = arith.constant 0 : index
      %53 = vector.load %arg10[%c0_35, %c0_36] : memref<2x32xf32, #tpu.memory_space<vmem>>, vector<2x32xf32>
      tpu.vector_store %arg10[%c0_35, %c0_36], %52 {strides = array<i32>} : memref<2x32xf32, #tpu.memory_space<vmem>>, vector<2x32xf32>,
    } else {
    }
    %c0 = arith.constant 0 : index
    %c0_1 = arith.constant 0 : index
    %c0_2 = arith.constant 0 : index
    %3 = vector.load %arg2[%c0, %c0_1, %c0_2] : memref<2x8x32xf32, #tpu.memory_space<vmem>>, vector<2x8x32xf32>
    %4 = vector.shape_cast %3 : vector<2x8x32xf32> to vector<16x32xf32>
    %c0_3 = arith.constant 0 : index
    %c0_4 = arith.constant 0 : index
    %5 = vector.load %arg3[%c0_3, %c0_4] : memref<32x32xf32, #tpu.memory_space<vmem>>, vector<32x32xf32>
    %cst = arith.constant dense<0.000000e+00> : vector<16x32xf32>
    %6 = tpu.matmul %4, %5, %cst {dimension_numbers = #tpu.dot_dimension_numbers<[1], [0], [0], [1], [0, 0, 1, 1], [], []>} : vector<16x32xf32>, vector<32x32xf32>, vector<16x32xf32> -> vector<16x32xf32>
    %c0_5 = arith.constant 0 : index
    %c0_6 = arith.constant 0 : index
    %7 = vector.load %arg4[%c0_5, %c0_6] : memref<1x32xf32, #tpu.memory_space<vmem>>, vector<1x32xf32>
    %8 = vector.broadcast %7 : vector<1x32xf32> to vector<16x32xf32>
    %9 = arith.addf %6, %8 : vector<16x32xf32>
    %10 = math.tanh %9 : vector<16x32xf32>
    %11 = vector.shape_cast %10 : vector<16x32xf32> to vector<2x8x32xf32>
    %c0_7 = arith.constant 0 : index
    %c0_8 = arith.constant 0 : index
    %12 = vector.load %arg5[%c0_7, %c0_8] : memref<1x32xf32, #tpu.memory_space<vmem>>, vector<1x32xf32>
    %13 = vector.shape_cast %12 : vector<1x32xf32> to vector<1x1x32xf32>
    %14 = vector.broadcast %13 : vector<1x1x32xf32> to vector<2x8x32xf32>
    %15 = arith.mulf %11, %14 : vector<2x8x32xf32>
    %cst_9 = arith.constant dense<0.000000e+00> : vector<2x8xf32>
    %16 = vector.multi_reduction <add>, %15, %cst_9 [2] : vector<2x8x32xf32> to vector<2x8xf32>
    %c0_10 = arith.constant 0 : index
    %17 = memref.load %arg6[%c0_10] : memref<1xf32, #tpu.memory_space<smem>>
    %18 = vector.broadcast %17 : f32 to vector<2x8xf32>
    %19 = arith.addf %16, %18 : vector<2x8xf32>
    %c0_11 = arith.constant 0 : index
    %c0_12 = arith.constant 0 : index
    %20 = vector.load %arg8[%c0_11, %c0_12] : memref<2x1xf32, #tpu.memory_space<vmem>>, vector<2x1xf32>
    %cst_13 = arith.constant dense<0xFF800000> : vector<2xf32>
    %21 = vector.multi_reduction <maximumf>, %19, %cst_13 [1] : vector<2x8xf32> to vector<2xf32>
    %22 = vector.shape_cast %21 : vector<2xf32> to vector<2x1xf32>
    %23 = arith.maximumf %20, %22 : vector<2x1xf32>
    %24 = arith.subf %20, %23 : vector<2x1xf32>
    %25 = math.exp %24 : vector<2x1xf32>
    %26 = vector.broadcast %23 : vector<2x1xf32> to vector<2x8xf32>
    %27 = arith.subf %19, %26 : vector<2x8xf32>
    %28 = math.exp %27 : vector<2x8xf32>
    %c0_14 = arith.constant 0 : index
    %c0_15 = arith.constant 0 : index
    %29 = vector.load %arg9[%c0_14, %c0_15] : memref<2x1xf32, #tpu.memory_space<vmem>>, vector<2x1xf32>
    %30 = arith.mulf %25, %29 : vector<2x1xf32>
    %cst_16 = arith.constant dense<0.000000e+00> : vector<2xf32>
    %31 = vector.multi_reduction <add>, %28, %cst_16 [1] : vector<2x8xf32> to vector<2xf32>
    %32 = vector.shape_cast %31 : vector<2xf32> to vector<2x1xf32>
    %33 = arith.addf %30, %32 : vector<2x1xf32>
    %c0_17 = arith.constant 0 : index
    %c0_18 = arith.constant 0 : index
    %34 = vector.load %arg9[%c0_17, %c0_18] : memref<2x1xf32, #tpu.memory_space<vmem>>, vector<2x1xf32>
    tpu.vector_store %arg9[%c0_17, %c0_18], %33 {strides = array<i32>} : memref<2x1xf32, #tpu.memory_space<vmem>>, vector<2x1xf32>,
    %35 = vector.shape_cast %28 : vector<2x8xf32> to vector<2x8x1xf32>
    %36 = vector.broadcast %35 : vector<2x8x1xf32> to vector<2x8x32xf32>
    %37 = arith.mulf %3, %36 : vector<2x8x32xf32>
    %c0_19 = arith.constant 0 : index
    %c0_20 = arith.constant 0 : index
    %38 = vector.load %arg10[%c0_19, %c0_20] : memref<2x32xf32, #tpu.memory_space<vmem>>, vector<2x32xf32>
    %39 = vector.broadcast %25 : vector<2x1xf32> to vector<2x32xf32>
    %40 = arith.mulf %39, %38 : vector<2x32xf32>
    %cst_21 = arith.constant dense<0.000000e+00> : vector<2x32xf32>
    %41 = vector.multi_reduction <add>, %37, %cst_21 [1] : vector<2x8x32xf32> to vector<2x32xf32>
    %42 = arith.addf %40, %41 : vector<2x32xf32>
    %c0_22 = arith.constant 0 : index
    %c0_23 = arith.constant 0 : index
    %43 = vector.load %arg10[%c0_22, %c0_23] : memref<2x32xf32, #tpu.memory_space<vmem>>, vector<2x32xf32>
    tpu.vector_store %arg10[%c0_22, %c0_23], %42 {strides = array<i32>} : memref<2x32xf32, #tpu.memory_space<vmem>>, vector<2x32xf32>,
    %c0_24 = arith.constant 0 : index
    %c0_25 = arith.constant 0 : index
    %44 = vector.load %arg8[%c0_24, %c0_25] : memref<2x1xf32, #tpu.memory_space<vmem>>, vector<2x1xf32>
    tpu.vector_store %arg8[%c0_24, %c0_25], %23 {strides = array<i32>} : memref<2x1xf32, #tpu.memory_space<vmem>>, vector<2x1xf32>,
    %c0_i32_26 = arith.constant 0 : i32
    %45 = arith.cmpi eq, %arg1, %c0_i32_26 : i32
    %46 = arith.extui %45 : i1 to i32
    %c0_i32_27 = arith.constant 0 : i32
    %47 = arith.cmpi ne, %46, %c0_i32_27 : i32
    scf.if %47 {
      %c0_28 = arith.constant 0 : index
      %c0_29 = arith.constant 0 : index
      %48 = vector.load %arg9[%c0_28, %c0_29] : memref<2x1xf32, #tpu.memory_space<vmem>>, vector<2x1xf32>
      %c0_30 = arith.constant 0 : index
      %c0_31 = arith.constant 0 : index
      %49 = vector.load %arg8[%c0_30, %c0_31] : memref<2x1xf32, #tpu.memory_space<vmem>>, vector<2x1xf32>
      %cst_32 = arith.constant 0.000000e+00 : f32
      %50 = vector.broadcast %cst_32 : f32 to vector<2x1xf32>
      %51 = arith.subf %50, %49 : vector<2x1xf32>
      %52 = math.exp %51 : vector<2x1xf32>
      %cst_33 = arith.constant 1.1920929E-7 : f32
      %53 = vector.broadcast %cst_33 : f32 to vector<2x1xf32>
      %54 = arith.mulf %53, %52 : vector<2x1xf32>
      %55 = arith.addf %48, %54 : vector<2x1xf32>
      %cst_34 = arith.constant 1.17549435E-38 : f32
      %56 = vector.broadcast %cst_34 : f32 to vector<2x1xf32>
      %57 = arith.maximumf %55, %56 : vector<2x1xf32>
      %58 = tpu.reciprocal %57 : vector<2x1xf32> -> vector<2x1xf32>
      %c0_35 = arith.constant 0 : index
      %c0_36 = arith.constant 0 : index
      %59 = vector.load %arg10[%c0_35, %c0_36] : memref<2x32xf32, #tpu.memory_space<vmem>>, vector<2x32xf32>
      %60 = vector.broadcast %58 : vector<2x1xf32> to vector<2x32xf32>
      %61 = arith.mulf %59, %60 : vector<2x32xf32>
      %c0_37 = arith.constant 0 : index
      %c0_38 = arith.constant 0 : index
      %62 = vector.load %arg7[%c0_37, %c0_38] : memref<2x32xf32, #tpu.memory_space<vmem>>, vector<2x32xf32>
      tpu.vector_store %arg7[%c0_37, %c0_38], %61 {strides = array<i32>} : memref<2x32xf32, #tpu.memory_space<vmem>>, vector<2x32xf32>,
    } else {
    }
    return
  }
  func.func @transform_0(%arg0: i32, %arg1: i32) -> (i32, i32, i32) {
    %c0_i32 = arith.constant 0 : i32
    %c0_i32_0 = arith.constant 0 : i32
    return %arg0, %arg1, %c0_i32 : i32, i32, i32
  }
  func.func @transform_1(%arg0: i32, %arg1: i32) -> (i32, i32) {
    %c0_i32 = arith.constant 0 : i32
    %c0_i32_0 = arith.constant 0 : i32
    %c0_i32_1 = arith.constant 0 : i32
    return %c0_i32, %c0_i32_0 : i32, i32
  }
  func.func @transform_2(%arg0: i32, %arg1: i32) -> (i32, i32) {
    %c0_i32 = arith.constant 0 : i32
    %c0_i32_0 = arith.constant 0 : i32
    %c0_i32_1 = arith.constant 0 : i32
    return %c0_i32, %c0_i32_0 : i32, i32
  }
  func.func @transform_3(%arg0: i32, %arg1: i32) -> (i32, i32) {
    %c0_i32 = arith.constant 0 : i32
    %c0_i32_0 = arith.constant 0 : i32
    %c0_i32_1 = arith.constant 0 : i32
    return %c0_i32, %c0_i32_0 : i32, i32
  }
  func.func @transform_4(%arg0: i32, %arg1: i32) -> i32 {
    %c0_i32 = arith.constant 0 : i32
    %c0_i32_0 = arith.constant 0 : i32
    return %c0_i32 : i32
  }
  func.func @transform_5(%arg0: i32, %arg1: i32) -> (i32, i32) {
    %c0_i32 = arith.constant 0 : i32
    %c0_i32_0 = arith.constant 0 : i32
    return %arg0, %c0_i32 : i32, i32
  }
}

</mosaic_0001>

<bundles_post_ra>
// kernel: tpu_custom_call.1
= control target key start
LH: loop header
LB: loop body
LE: loop exit
PB: predicated region body
PF: predicated region fallthrough
CT: control target
= control target key end

     0   :  { %11 = vsyncpa [#allocation7], 0  ;;  %s548_s0 = inlined_call_operand.hbm [shape: f32[2,8,32], index: 0, kind: input, shape index: {}]   ;;  %s549_s1 = inlined_call_operand.hbm [shape: f32[32,32], index: 1, kind: input, shape index: {}]   ;;  %s550_s2 = inlined_call_operand.vmem [shape: f32[1,32], index: 2, kind: input, shape index: {}]   ;;  %s551_s3 = inlined_call_operand.vmem [shape: f32[1,32], index: 3, kind: input, shape index: {}]   ;;  %s552_s4 = inlined_call_operand.<no memory space> [shape: f32[1], index: 4, kind: input, shape index: {}]   ;;  %s553_s5 = inlined_call_operand.hbm [shape: f32[2,32], index: 5, kind: output, shape index: {}]  }
   0x1   :  { %12 = vsyncpa [#allocation10], 0 }
   0x2   :  { %13 = vsyncpa [#allocation8], 0  ;;  %s439_s18 = smov [#allocation6]   ;;  %s367_s22 = scalar_lea.hbm %s548_s0, 256 }
   0x3   :  { %s19_s19 = sshll.u32 %s439_s18, 4  ;;  %p368_p0 = scmp.ne.s32.totalorder %s548_s0, %s367_s22  ;;  %s20_s19 = int_to_ptr.vmem [resolvable:$true] %s19_s19 }
   0x4   :  { %p371_p1 = scmp.lt.u32.totalorder %s367_s22, %s548_s0 }
   0x6   :  { %p373_p2 = pnand %p371_p1, %p368_p0 }
   0x8   :  { %376 = shalt.err (!%p373_p2)
}
   0x9   :  { %s377_s27 = scalar_lea.vmem %s20_s19, 256  ;;  %p382_p4 = scmp.lt.s32.totalorder %s20_s19, %s20_s19 }
   0xa   :  { %p378_p3 = scmp.ne.s32.totalorder %s20_s19, %s377_s27  ;;  %p383_p5 = scmp.lt.s32.totalorder %s377_s27, %s377_s27 }
   0xc   :  { %p384_p6 = por %p383_p5, %p382_p4 }
   0xe   :  { %p385_p7 = pnand %p384_p6, %p378_p3 }
  0x10   :  { %388 = shalt.err (!%p385_p7)
}
  0x11   :  { %s440_s28 = smov 128   ;;  %s441_s29 = smov 8  }
  0x12   :  { %25 = dma.hbm_to_vmem [thread:$0]  %s548_s0, 256, %s20_s19, [#allocation7], %s440_s28, %s440_s28, %s441_s29  }
  0x13   :  { %s442_s7 = smov [#allocation9]   ;;  %s389_s11 = scalar_lea.hbm %s549_s1, 512 }
  0x14   :  { %s31_s8 = sshll.u32 %s442_s7, 4  ;;  %p390_p8 = scmp.ne.s32.totalorder %s549_s1, %s389_s11  ;;  %s32_s8 = int_to_ptr.vmem [resolvable:$true] %s31_s8 }
  0x15   :  { %p393_p9 = scmp.lt.u32.totalorder %s389_s11, %s549_s1 }
  0x17   :  { %p395_p10 = pnand %p393_p9, %p390_p8 }
  0x19   :  { %398 = shalt.err (!%p395_p10)
}
  0x1a   :  { %s399_s16 = scalar_lea.vmem %s32_s8, 512  ;;  %p404_p12 = scmp.lt.s32.totalorder %s32_s8, %s32_s8 }
  0x1b   :  { %p400_p11 = scmp.ne.s32.totalorder %s32_s8, %s399_s16  ;;  %p405_p13 = scmp.lt.s32.totalorder %s399_s16, %s399_s16 }
  0x1d   :  { %p406_p0 = por %p405_p13, %p404_p12 }
  0x1f   :  { %p407_p1 = pnand %p406_p0, %p400_p11 }
  0x21   :  { %410 = shalt.err (!%p407_p1)
}
  0x22   :  { %37 = dma.hbm_to_vmem [thread:$0]  %s549_s1, 512, %s32_s8, [#allocation10], %s440_s28, %s440_s28, %s441_s29  }
  0x23   :  { %433 = dma.done.wait [#allocation7], 256  }
  0x24   :  { %434 = vsyncadd [#allocation7], 4294967040 }
  0x25   :  { %435 = dma.done.wait [#allocation10], 512  }
  0x26   :  { %436 = vsyncadd [#allocation10], 4294966784  ;;  %vm72_vm0 = vcmask 261120   ;;  %v61_v0 = vld [vmem:[#allocation9] sm:$0xff]  ;;  %v62_v1 = vld [vmem:[#allocation9 + $0x8] sm:$0xff]  ;;  %vm54_vm1 = vcmask 1024   ;;  %v178_v21 = vlaneseq  ;;  %v172_v24 = vstv %s552_s4 }
  0x27   :  { %v63_v2 = vld [vmem:[#allocation9 + $0x10] sm:$0xff]  ;;  %v335_v3 = vpack.c.bf16 %v62_v1, %v61_v0  ;;  %v64_v4 = vld [vmem:[#allocation9 + $0x18] sm:$0xff]  ;;  %v314_v8 = vld [vmem:[%s550_s2] ss:$0 sm:$0xff]  ;;  %v443_v20 = vmov -inf   ;;  %vm188_vm2 = vcmask 1041409  }
  0x28   :  { %v501_v5 = vld [vmem:[#allocation6] sm:$0xff]  ;;  %v339_v6 = vpack.c.bf16 %v64_v4, %v63_v2  ;;  %v505_v7 = vld [vmem:[#allocation6 + $0x8] sm:$0xff]  ;;  %v317_v13 = vld [vmem:[%s551_s3] ss:$0 sm:$0xff]  ;;  %55 = vst.msk [vmem:[#allocation2] sm:$0x3] %vm54_vm1, %v443_v20 }
  0x29   :  { %332 = vmatprep.mubr.msk.f32.mxu0 %vm72_vm0, %v501_v5  ;;  %336 = vmatprep.subr.bf16.mxu0 %v335_v3  ;;  %v179_v22 = vand.u32 127, %v178_v21  ;;  %v181_v23 = vshrl.u32 %v178_v21, 7  ;;  %vm191_vm3 = vcmask 58368   ;;  %v444_v34 = vmov 0   ;;  %s446_s3 = smov [#allocation11]  }
  0x2a   :  { %338 = vmatpush3.bf16.msra.mxu0 %v335_v3  ;;  %351 = vset.pattern.permute.xlu1 %v444_v34  ;;  %v445_v35 = vmov 0.0   ;;  %vm57_vm4 = vcmask 254976   ;;  %s304_s4 = sshll.u32 %s446_s3, 4  ;;  %s305_s4 = int_to_ptr.vmem [resolvable:$true] %s304_s4 }
  0x2b   :  { %340 = vmatprep.subr.bf16.mxu0 %v339_v6  ;;  %v182_v26 = vsub.s32 %v179_v22, %v181_v23  ;;  %352 = vset.pattern.permute.xlu0 %v444_v34  ;;  %56 = vst.msk [vmem:[#allocation3] sm:$0x3] %vm54_vm1, %v445_v35  ;;  %v205_v40 = vsub.s32 0, %v181_v23  ;;  %v209_v41 = vsub.s32 1, %v181_v23  ;;  %s411_s22 = scalar_lea.vmem %s305_s4, 32  ;;  %p416_p3 = scmp.lt.s32.totalorder %s305_s4, %s305_s4 }
  0x2c   :  { %58 = vst.msk [vmem:[#allocation4] sm:$0x3] %vm57_vm4, %v445_v35  ;;  %p412_p2 = scmp.ne.s32.totalorder %s305_s4, %s411_s22  ;;  %p417_p4 = scmp.lt.s32.totalorder %s411_s22, %s411_s22 }
  0x2e   :  { %342 = vmatpush3.bf16.msra.mxu0 %v339_v6  ;;  %p418_p5 = por %p417_p4, %p416_p3 }
  0x2f   :  { %v175_v36 = vld [vmem:[#allocation2] sm:$0x3] }
  0x30   :  { %p419_p6 = pnand %p418_p5, %p412_p2 }
  0x31   :  { %333 = vmatmul.mubr.msk.f32.vlgmr.msra.gmra.mrb[0].mxu0 %vm72_vm0, %v505_v7 }
 0x104   :  { %v334_v9 = vpop.f32.mrb[0].mxu0 }
 0x105   :  { %v151_v10 = vadd.f32 %v334_v9, %v314_v8  ;;  %v145_v11 = vpop.f32.mrb[1].mxu0 }
 0x106   :  { %v146_v12 = vadd.f32 %v314_v8, %v145_v11 }
 0x107   :  { %353 = vtanh.f32 %v151_v10 }
 0x108   :  { %355 = vtanh.f32 %v146_v12 }
 0x111   :  { %v354_v14 = vpop.eup %353 }
 0x112   :  { %v356_v15 = vpop.eup %355  ;;  %v164_v18 = vmul.f32 %v354_v14, %v317_v13 }
 0x113   :  { %v163_v16 = vmul.f32 %v356_v15, %v317_v13 }
 0x114   :  { %v168_v19 = vsel %vm72_vm0, %v164_v18, 0.0 }
 0x115   :  { %v165_v17 = vsel %vm72_vm0, %v163_v16, 0.0 }
 0x116   :  { %166 = vadd.xlane.f32.xlu0 %v165_v17 }
 0x11a   :  { %169 = vadd.xlane.f32.xlu0 %v168_v19  ;;  %v219_v19 = vld [vmem:[#allocation3] sm:$0x3] }
 0x1a3   :  { %v167_v25 = vpop.xlane.xlu0 %166 }
 0x1a4   :  { %v173_v27 = vadd.f32 %v172_v24, %v167_v25 }
 0x1a6   :  { %v183_v30 = vrot.slane %v173_v27, %v182_v26 }
 0x1a7   :  { %v170_v28 = vpop.xlane.xlu0 %169 }
 0x1a8   :  { %v174_v29 = vadd.f32 %v172_v24, %v170_v28 }
 0x1aa   :  { %v187_v31 = vrot.slane %v174_v29, %v182_v26 }
 0x1ac   :  { %v189_v32 = vsel %vm188_vm2, %v187_v31, %v183_v30 }
 0x1ad   :  { %v192_v33 = vsel %vm191_vm3, %v189_v32, -inf }
 0x1ae   :  { %193 = vmax.xlane.f32.xlu1 %v192_v33 }
 0x23b   :  { %v194_v37 = vpop.xlane.xlu1 %193 }
 0x23c   :  { %v195_v38 = vmax.f32 %v175_v36, %v194_v37 }
 0x23e   :  { %v196_v39 = vsub.f32 %v175_v36, %v195_v38  ;;  %277 = vst.msk [vmem:[#allocation2] sm:$0x3] %vm54_vm1, %v195_v38  ;;  %201 = vperm.xlu1 %351, %v195_v38  }
 0x240   :  { %v197_v49 = vmul.f32 1.442695, %v196_v39 }
 0x245   :  { %v282_v16 = vld [vmem:[#allocation2] sm:$0x3] }
 0x246   :  { %v283_v17 = vsub.f32 0.0, %v282_v16 }
 0x248   :  { %v284_v18 = vmul.f32 1.442695, %v283_v17 }
 0x2bd   :  { %v202_v42 = vpop.permute.xlu1 %201 }
 0x2be   :  { %v206_v43 = vrot.slane %v202_v42, %v205_v40  ;;  %v210_v44 = vrot.slane %v202_v42, %v209_v41 }
 0x2c0   :  { %v213_v45 = vsub.f32 %v173_v27, %v206_v43  ;;  %v214_v46 = vsub.f32 %v174_v29, %v210_v44 }
 0x2c2   :  { %v215_v47 = vmul.f32 1.442695, %v213_v45  ;;  %v217_v48 = vmul.f32 1.442695, %v214_v46 }
 0x2c4   :  { %357 = vpow2.f32 %v215_v47 }
 0x2c5   :  { %359 = vpow2.f32 %v217_v48 }
 0x2c6   :  { %361 = vpow2.f32 %v197_v49 }
 0x2c7   :  { %363 = vpow2.f32 %v284_v18 }
 0x2ce   :  { %v358_v50 = vpop.eup %357 }
 0x2cf   :  { %v360_v51 = vpop.eup %359  ;;  %224 = vperm.xlu0 %352, %v358_v50  }
 0x2d0   :  { %227 = vperm.xlu1 %351, %v360_v51   ;;  %v362_v52 = vpop.eup %361 }
 0x2d1   :  { %v220_v20 = vmul.f32 %v362_v52, %v219_v19  ;;  %v364_v23 = vpop.eup %363 }
 0x2d2   :  { %v286_v24 = vmul.f32 1.1920929e-07, %v364_v23 }
 0x2d3   :  { %252 = vperm.xlu0 %352, %v362_v52  }
 0x34e   :  { %v225_v53 = vpop.permute.xlu0 %224 }
 0x34f   :  { %v228_v54 = vpop.permute.xlu1 %227  ;;  %v232_v55 = vrot.slane %v225_v53, %v182_v26  ;;  %v247_v56 = vmul.f32 %v225_v53, %v501_v5 }
 0x350   :  { %v236_v57 = vrot.slane %v228_v54, %v182_v26  ;;  %v248_v58 = vmul.f32 %v228_v54, %v505_v7  ;;  %v249_v7 = vld [vmem:[#allocation4] sm:$0x3] }
 0x351   :  { %v256_v59 = vsel %vm72_vm0, %v247_v56, 0.0 }
 0x352   :  { %v263_v60 = vsel %vm72_vm0, %v248_v58, 0.0  ;;  %v257_v61 = vrot.slane %v256_v59, 4  ;;  %v237_v62 = vsel %vm188_vm2, %v236_v57, %v232_v55  ;;  %v253_v10 = vpop.permute.xlu0 %252 }
 0x353   :  { %v264_v63 = vrot.slane %v263_v60, 4  ;;  %v239_v0 = vsel %vm191_vm3, %v237_v62, 0.0  ;;  %v255_v13 = vmul.f32 %v253_v10, %v249_v7 }
 0x354   :  { %v258_v1 = vadd.f32 %v257_v61, %v256_v59  ;;  %240 = vadd.xlane.f32.xlu1 %v239_v0 }
 0x355   :  { %v265_v2 = vadd.f32 %v264_v63, %v263_v60 }
 0x356   :  { %v259_v3 = vrot.slane %v258_v1, 2 }
 0x357   :  { %v266_v4 = vrot.slane %v265_v2, 2 }
 0x358   :  { %v260_v6 = vadd.f32 %v259_v3, %v258_v1 }
 0x359   :  { %v267_v5 = vadd.f32 %v266_v4, %v265_v2 }
 0x35a   :  { %v261_v8 = vrot.slane %v260_v6, 1 }
 0x35b   :  { %v268_v9 = vrot.slane %v267_v5, 1 }
 0x35c   :  { %v262_v11 = vadd.f32 %v261_v8, %v260_v6 }
 0x35d   :  { %v269_v12 = vadd.f32 %v268_v9, %v267_v5 }
 0x35f   :  { %v272_v14 = vsel %vm188_vm2, %v269_v12, %v262_v11 }
 0x360   :  { %v274_v15 = vadd.f32 %v272_v14, %v255_v13 }
 0x362   :  { %276 = vst.msk [vmem:[#allocation4] sm:$0x3] %vm57_vm4, %v274_v15 }
 0x369   :  { %v290_v29 = vld [vmem:[#allocation4] sm:$0x3] }
 0x3e1   :  { %v241_v21 = vpop.xlane.xlu1 %240 }
 0x3e2   :  { %v242_v22 = vadd.f32 %v241_v21, %v220_v20 }
 0x3e4   :  { %244 = vst.msk [vmem:[#allocation3] sm:$0x3] %vm54_vm1, %v242_v22 }
 0x3eb   :  { %v281_v25 = vld [vmem:[#allocation3] sm:$0x3] }
 0x3ec   :  { %v287_v26 = vadd.f32 %v286_v24, %v281_v25 }
 0x3ee   :  { %v288_v27 = vmax.f32 %v287_v26, 1.1754944e-38 }
 0x3f0   :  { %365 = vrcp.f32 %v288_v27 }
 0x3fa   :  { %v366_v28 = vpop.eup %365 }
 0x3fb   :  { %293 = vperm.xlu0 %352, %v366_v28  }
 0x47a   :  { %v294_v30 = vpop.permute.xlu0 %293 }
 0x47b   :  { %v296_v31 = vmul.f32 %v294_v30, %v290_v29 }
 0x47d   :  { %297 = vst.msk [vmem:[#allocation11] sm:$0x3] %vm57_vm4, %v296_v31 }
 0x47e   :  { %422 = shalt.err (!%p419_p6)
}
 0x47f   :  { %s423_s25 = scalar_lea.hbm %s553_s5, 32 }
 0x480   :  { %p424_p7 = scmp.ne.s32.totalorder %s553_s5, %s423_s25  ;;  %p427_p8 = scmp.lt.u32.totalorder %s423_s25, %s553_s5 }
 0x482   :  { %p429_p9 = pnand %p427_p8, %p424_p7 }
 0x484   :  { %432 = shalt.err (!%p429_p9)
}
 0x485   :  { %307 = dma.vmem_to_hbm [thread:$0]  %s305_s4, 32, %s553_s5, [#allocation8]  }
 0x486   :  { %437 = dma.done.wait [#allocation8], 32  }
 0x487   :  { %438 = vsyncadd [#allocation8], 4294967264 }
 0x488   :  { %311 = vsyncpa [#allocation7], 1 }
 0x489   :  { %312 = vsyncpa [#allocation10], 1 }
 0x48a   :  { %313 = vsyncpa [#allocation8], 1 }

</bundles_post_ra>
